<compile_context>
chip_gen: v7x
topology: tpu7x:2x2x1
jax: 0.10.0
libtpu: 0.0.40
codegen_flags: <defaults>
</compile_context>

<pallas_src>
import functools

import jax
import jax.numpy as jnp
from jax import lax
from jax.experimental import pallas as pl
from jax.experimental.pallas import tpu as pltpu

_LANES = 128
_ACC_SUBLANES = 8                       # accumulator block sublanes (f32 native tile)
_TARGET_BLOCK_BYTES = 4 * 1024 * 1024   # ~4 MiB per input block per buffer
_EPS = 0.0001


def _sublane_align(dtype) -> int:
    """Minimum sublane granularity for a dtype: f32 -> 8, bf16 -> 16, int8 -> 32."""
    return max(8, 32 // jnp.dtype(dtype).itemsize)


def _dice_kernel(x_ref, t_ref, inter_ref, union_ref, *,
                 rows, tile_rows, steps, mask_rows):
    c = pl.program_id(0)   # core-parallel axis (2-wide; sharded across TCs on v7x)
    i = pl.program_id(1)   # sequential reduction axis

    @pl.when(i == 0)
    def _init():
        inter_ref[...] = jnp.zeros_like(inter_ref)
        union_ref[...] = jnp.zeros_like(union_ref)

    x = x_ref[...].astype(jnp.float32)           # (tile_rows, 128)
    t = t_ref[...].astype(jnp.float32)

    if mask_rows:
        # Logical (unclamped) row offset of this block; rows at/after `rows`
        # are zeroed so partial trailing blocks and redundant clamped blocks
        # contribute exactly 0 to every sum.
        start = (c * steps + i) * tile_rows
        rid = lax.broadcasted_iota(jnp.int32, x.shape, 0) + start
        keep = rid < rows
        x = jnp.where(keep, x, 0.0)
        t = jnp.where(keep, t, 0.0)

    # Reduce each tile to an (8, 128) partial: pure VPU adds, no cross-lane XLU
    # work in the hot loop; the reshape matches the native (8,128) tiling.
    groups = tile_rows // _ACC_SUBLANES
    p_inter = (x * t).reshape(groups, _ACC_SUBLANES, _LANES)
    p_union = (x * x + t * t).reshape(groups, _ACC_SUBLANES, _LANES)
    inter_ref[...] += jnp.sum(p_inter, axis=0, keepdims=True)
    union_ref[...] += jnp.sum(p_union, axis=0, keepdims=True)


def _dice_coeff_impl(input_arr, target_arr, tile_rows):
    x = input_arr.reshape(-1)
    t = target_arr.reshape(-1)
    assert x.shape == t.shape, "input and target must have the same element count"
    n = x.shape[0]

    sub = max(_sublane_align(x.dtype), _sublane_align(t.dtype))
    chunk = sub * _LANES

    # Pad only to the minimal sublane-aligned chunk (zero padding adds exactly 0
    # to x*t, x*x and t*t).  When n is already chunk-aligned -- the common case
    # for flattened probability maps -- no copy is made at all.
    n_pad = ((n + chunk - 1) // chunk) * chunk
    if n_pad != n:
        x = jnp.pad(x, (0, n_pad - n))
        t = jnp.pad(t, (0, n_pad - n))
    rows = n_pad // _LANES

    x_bytes = jnp.dtype(x.dtype).itemsize
    t_bytes = jnp.dtype(t.dtype).itemsize
    if tile_rows is None:
        tile_rows = _TARGET_BLOCK_BYTES // (_LANES * max(x_bytes, t_bytes))
    tile_rows = max(sub, (int(tile_rows) // sub) * sub)
    tile_rows = min(tile_rows, rows)

    blocks = (rows + tile_rows - 1) // tile_rows      # total row tiles (last may be partial)
    n_cores = 2 if blocks >= 2 else 1                 # shard the reduction across TCs (v7x)
    steps = (blocks + n_cores - 1) // n_cores
    mask_rows = (n_cores * steps * tile_rows) != rows
    clamp = (n_cores * steps) > blocks                # last core may own a redundant block

    x2 = x.reshape(rows, _LANES)                      # lane-dense, storage dtype
    t2 = t.reshape(rows, _LANES)

    def in_map(c, i):
        b = c * steps + i
        if clamp:
            # Redundant trailing block: DMA any in-bounds tile; the kernel's
            # row mask (start >= rows) zeroes its contribution.
            b = jnp.minimum(b, blocks - 1)
        return (b, 0)

    kernel = functools.partial(_dice_kernel, rows=rows, tile_rows=tile_rows,
                               steps=steps, mask_rows=mask_rows)

    in_block_bytes = tile_rows * _LANES * (x_bytes + t_bytes)
    vmem_limit = int(min(2 * in_block_bytes + (4 << 20), 64 << 20))

    inter_p, union_p = pl.pallas_call(
        kernel,
        out_shape=(
            jax.ShapeDtypeStruct((n_cores, _ACC_SUBLANES, _LANES), jnp.float32),
            jax.ShapeDtypeStruct((n_cores, _ACC_SUBLANES, _LANES), jnp.float32),
        ),
        grid_spec=pltpu.PrefetchScalarGridSpec(
            num_scalar_prefetch=0,
            grid=(n_cores, steps),
            in_specs=[
                pl.BlockSpec((tile_rows, _LANES), in_map),
                pl.BlockSpec((tile_rows, _LANES), in_map),
            ],
            out_specs=[
                pl.BlockSpec((1, _ACC_SUBLANES, _LANES), lambda c, i: (c, 0, 0)),
                pl.BlockSpec((1, _ACC_SUBLANES, _LANES), lambda c, i: (c, 0, 0)),
            ],
        ),
        compiler_params=pltpu.CompilerParams(
            dimension_semantics=("parallel", "arbitrary"),
            vmem_limit_bytes=vmem_limit,
        ),
    )(x2, t2)

    # Tiny epilogue; fuses into one small XLA fusion because the wrapper is jitted.
    inter = jnp.sum(inter_p) + jnp.float32(_EPS)
    union = jnp.sum(union_p) + jnp.float32(_EPS)
    return 2.0 * inter / union


_dice_coeff_jit = jax.jit(_dice_coeff_impl, static_argnums=(2,))


def dice_coeff(input_arr, target_arr, *, tile_rows=None):
    """2*(x.t + 1e-4) / (sum(x^2) + sum(t^2) + 1e-4), matching DiceCoeff.forward."""
    return _dice_coeff_jit(input_arr, target_arr, tile_rows)


def _reference_dice(input_arr, target_arr):
    # Pure-JAX reference replicating the PyTorch module literally.
    x = input_arr.reshape(-1).astype(jnp.float32)
    t = target_arr.reshape(-1).astype(jnp.float32)
    inter = jnp.dot(x, t) + 0.0001
    union = jnp.sum(x * x) + jnp.sum(t * t) + 0.0001
    return 2.0 * inter / union


if __name__ == "__main__":
    key = jax.random.PRNGKey(0)
    k1, k2, k3, k4, k5, k6 = jax.random.split(key, 6)

    # 1) Typical use: flattened probability map vs. binary mask
    #    (chunk-aligned, zero padding, single reduction block).
    N, C, H, W = 2, 4, 16, 16
    inp = jax.nn.sigmoid(jax.random.normal(k1, (N, C, H, W), dtype=jnp.float32))
    tgt = (jax.random.uniform(k2, (N, C, H, W)) > 0.5).astype(jnp.float32)
    y = jax.block_until_ready(dice_coeff(inp, tgt))
    y_ref = _reference_dice(inp, tgt)
    assert jnp.allclose(y, y_ref, atol=1e-5, rtol=1e-5), (y, y_ref)

    # 2) Odd element count -> minimal sublane-chunk pad path.
    inp2 = jax.nn.sigmoid(jax.random.normal(k3, (2, 1, 13, 17), dtype=jnp.float32))
    tgt2 = (jax.random.uniform(k4, (2, 1, 13, 17)) > 0.5).astype(jnp.float32)
    y2 = jax.block_until_ready(dice_coeff(inp2, tgt2))
    assert jnp.allclose(y2, _reference_dice(inp2, tgt2), atol=1e-5, rtol=1e-5)

    # 3) Small explicit tile forces the 2-wide parallel grid plus the partial /
    #    redundant trailing-block masking and clamping paths (3 blocks, 2 cores).
    inp3 = jax.nn.sigmoid(jax.random.normal(k5, (3, 1, 32, 32), dtype=jnp.float32))
    tgt3 = (jax.random.uniform(k6, (3, 1, 32, 32)) > 0.5).astype(jnp.float32)
    y3 = jax.block_until_ready(dice_coeff(inp3, tgt3, tile_rows=8))
    assert jnp.allclose(y3, _reference_dice(inp3, tgt3), atol=1e-5, rtol=1e-5)

    # 4) bf16 storage dtype -> 16-row sublane alignment path, in-kernel upcast.
    inp4 = inp.astype(jnp.bfloat16)
    tgt4 = tgt.astype(jnp.bfloat16)
    y4 = jax.block_until_ready(dice_coeff(inp4, tgt4))
    assert jnp.allclose(y4, _reference_dice(inp4, tgt4), atol=1e-4, rtol=1e-4)

    print("KERNEL_OK")
</pallas_src>

<mosaic_0001>
module attributes {stable_mosaic.version = 11 : i64} {
  func.func @_dice_kernel(%arg0: i32, %arg1: i32, %arg2: memref<16x128xf32, #tpu.memory_space<vmem>>, %arg3: memref<16x128xf32, #tpu.memory_space<vmem>>, %arg4: memref<1x8x128xf32, #tpu.memory_space<vmem>>, %arg5: memref<1x8x128xf32, #tpu.memory_space<vmem>>) attributes {dimension_semantics = [#tpu.dimension_semantics<parallel>, #tpu.dimension_semantics<arbitrary>], iteration_bounds = array<i64: 1, 1>, scalar_prefetch = 0 : i64, scratch_operands = 0 : i64, tpu.core_type = #tpu.core_type<tc>, window_params = [{transform_indices = @transform_0, window_bounds = array<i64: 16, 128>}, {transform_indices = @transform_1, window_bounds = array<i64: 16, 128>}, {transform_indices = @transform_2, window_bounds = array<i64: 1, 8, 128>}, {transform_indices = @transform_3, window_bounds = array<i64: 1, 8, 128>}]} {
    %c0_i32 = arith.constant 0 : i32
    %0 = arith.cmpi eq, %arg1, %c0_i32 : i32
    %1 = arith.extui %0 : i1 to i32
    %c0_i32_0 = arith.constant 0 : i32
    %2 = arith.cmpi ne, %1, %c0_i32_0 : i32
    scf.if %2 {
      %cst_17 = arith.constant 0.000000e+00 : f32
      %21 = vector.broadcast %cst_17 : f32 to vector<1x8x128xf32>
      %c0_18 = arith.constant 0 : index
      %c0_19 = arith.constant 0 : index
      %c0_20 = arith.constant 0 : index
      %22 = vector.load %arg4[%c0_18, %c0_19, %c0_20] : memref<1x8x128xf32, #tpu.memory_space<vmem>>, vector<1x8x128xf32>
      tpu.vector_store %arg4[%c0_18, %c0_19, %c0_20], %21 {strides = array<i32>} : memref<1x8x128xf32, #tpu.memory_space<vmem>>, vector<1x8x128xf32>,
      %cst_21 = arith.constant 0.000000e+00 : f32
      %23 = vector.broadcast %cst_21 : f32 to vector<1x8x128xf32>
      %c0_22 = arith.constant 0 : index
      %c0_23 = arith.constant 0 : index
      %c0_24 = arith.constant 0 : index
      %24 = vector.load %arg5[%c0_22, %c0_23, %c0_24] : memref<1x8x128xf32, #tpu.memory_space<vmem>>, vector<1x8x128xf32>
      tpu.vector_store %arg5[%c0_22, %c0_23, %c0_24], %23 {strides = array<i32>} : memref<1x8x128xf32, #tpu.memory_space<vmem>>, vector<1x8x128xf32>,
    } else {
    }
    %c0 = arith.constant 0 : index
    %c0_1 = arith.constant 0 : index
    %3 = vector.load %arg2[%c0, %c0_1] : memref<16x128xf32, #tpu.memory_space<vmem>>, vector<16x128xf32>
    %c0_2 = arith.constant 0 : index
    %c0_3 = arith.constant 0 : index
    %4 = vector.load %arg3[%c0_2, %c0_3] : memref<16x128xf32, #tpu.memory_space<vmem>>, vector<16x128xf32>
    %5 = arith.mulf %3, %4 : vector<16x128xf32>
    %6 = vector.shape_cast %5 : vector<16x128xf32> to vector<2x8x128xf32>
    %7 = arith.mulf %3, %3 : vector<16x128xf32>
    %8 = arith.mulf %4, %4 : vector<16x128xf32>
    %9 = arith.addf %7, %8 : vector<16x128xf32>
    %10 = vector.shape_cast %9 : vector<16x128xf32> to vector<2x8x128xf32>
    %c0_4 = arith.constant 0 : index
    %c0_5 = arith.constant 0 : index
    %c0_6 = arith.constant 0 : index
    %11 = vector.load %arg4[%c0_4, %c0_5, %c0_6] : memref<1x8x128xf32, #tpu.memory_space<vmem>>, vector<1x8x128xf32>
    %cst = arith.constant dense<0.000000e+00> : vector<8x128xf32>
    %12 = vector.multi_reduction <add>, %6, %cst [0] : vector<2x8x128xf32> to vector<8x128xf32>
    %13 = vector.shape_cast %12 : vector<8x128xf32> to vector<1x8x128xf32>
    %14 = arith.addf %11, %13 : vector<1x8x128xf32>
    %c0_7 = arith.constant 0 : index
    %c0_8 = arith.constant 0 : index
    %c0_9 = arith.constant 0 : index
    %15 = vector.load %arg4[%c0_7, %c0_8, %c0_9] : memref<1x8x128xf32, #tpu.memory_space<vmem>>, vector<1x8x128xf32>
    tpu.vector_store %arg4[%c0_7, %c0_8, %c0_9], %14 {strides = array<i32>} : memref<1x8x128xf32, #tpu.memory_space<vmem>>, vector<1x8x128xf32>,
    %c0_10 = arith.constant 0 : index
    %c0_11 = arith.constant 0 : index
    %c0_12 = arith.constant 0 : index
    %16 = vector.load %arg5[%c0_10, %c0_11, %c0_12] : memref<1x8x128xf32, #tpu.memory_space<vmem>>, vector<1x8x128xf32>
    %cst_13 = arith.constant dense<0.000000e+00> : vector<8x128xf32>
    %17 = vector.multi_reduction <add>, %10, %cst_13 [0] : vector<2x8x128xf32> to vector<8x128xf32>
    %18 = vector.shape_cast %17 : vector<8x128xf32> to vector<1x8x128xf32>
    %19 = arith.addf %16, %18 : vector<1x8x128xf32>
    %c0_14 = arith.constant 0 : index
    %c0_15 = arith.constant 0 : index
    %c0_16 = arith.constant 0 : index
    %20 = vector.load %arg5[%c0_14, %c0_15, %c0_16] : memref<1x8x128xf32, #tpu.memory_space<vmem>>, vector<1x8x128xf32>
    tpu.vector_store %arg5[%c0_14, %c0_15, %c0_16], %19 {strides = array<i32>} : memref<1x8x128xf32, #tpu.memory_space<vmem>>, vector<1x8x128xf32>,
    return
  }
  func.func @transform_0(%arg0: i32, %arg1: i32) -> (i32, i32) {
    %c1_i32 = arith.constant 1 : i32
    %0 = arith.muli %arg0, %c1_i32 : i32
    %1 = arith.addi %0, %arg1 : i32
    %c0_i32 = arith.constant 0 : i32
    %c0_i32_0 = arith.constant 0 : i32
    return %1, %c0_i32 : i32, i32
  }
  func.func @transform_1(%arg0: i32, %arg1: i32) -> (i32, i32) {
    %c1_i32 = arith.constant 1 : i32
    %0 = arith.muli %arg0, %c1_i32 : i32
    %1 = arith.addi %0, %arg1 : i32
    %c0_i32 = arith.constant 0 : i32
    %c0_i32_0 = arith.constant 0 : i32
    return %1, %c0_i32 : i32, i32
  }
  func.func @transform_2(%arg0: i32, %arg1: i32) -> (i32, i32, i32) {
    %c0_i32 = arith.constant 0 : i32
    %c0_i32_0 = arith.constant 0 : i32
    %c0_i32_1 = arith.constant 0 : i32
    return %arg0, %c0_i32, %c0_i32_0 : i32, i32, i32
  }
  func.func @transform_3(%arg0: i32, %arg1: i32) -> (i32, i32, i32) {
    %c0_i32 = arith.constant 0 : i32
    %c0_i32_0 = arith.constant 0 : i32
    %c0_i32_1 = arith.constant 0 : i32
    return %arg0, %c0_i32, %c0_i32_0 : i32, i32, i32
  }
}

</mosaic_0001>

<bundles_post_ra>
// kernel: _dice_coeff_impl.1
= control target key start
LH: loop header
LB: loop body
LE: loop exit
PB: predicated region body
PF: predicated region fallthrough
CT: control target
= control target key end

     0   :  { %s142_s0 = inlined_call_operand.vmem [shape: f32[16,128], index: 0, kind: input, shape index: {}]   ;;  %s143_s1 = inlined_call_operand.vmem [shape: f32[16,128], index: 1, kind: input, shape index: {}]   ;;  %s144_s2 = inlined_call_operand.vmem [shape: f32[1,8,128], index: 2, kind: output, shape index: {0}]   ;;  %s145_s3 = inlined_call_operand.vmem [shape: f32[1,8,128], index: 3, kind: output, shape index: {1}]  }
   0x1   :  { %v63_v0 = vld [vmem:[%s142_s0] sm:$0xff]  ;;  %v64_v1 = vld [vmem:[%s142_s0 + $0x8] sm:$0xff] }
   0x2   :  { %v65_v2 = vld [vmem:[%s143_s1] sm:$0xff]  ;;  %v66_v3 = vld [vmem:[%s143_s1 + $0x8] sm:$0xff]  ;;  %v69_v5 = vmul.f32 %v63_v0, %v63_v0  ;;  %v70_v6 = vmul.f32 %v64_v1, %v64_v1 }
   0x3   :  { %v67_v4 = vmul.f32 %v65_v2, %v63_v0  ;;  %v71_v7 = vmul.f32 %v65_v2, %v65_v2  ;;  %v68_v8 = vmul.f32 %v66_v3, %v64_v1  ;;  %v72_v9 = vmul.f32 %v66_v3, %v66_v3 }
   0x5   :  { %v73_v10 = vadd.f32 %v71_v7, %v69_v5  ;;  %v76_v11 = vadd.f32 %v68_v8, %v67_v4  ;;  %v74_v12 = vadd.f32 %v72_v9, %v70_v6 }
   0x7   :  { %v80_v13 = vadd.f32 %v74_v12, %v73_v10  ;;  %78 = vst [vmem:[%s144_s2] sm:$0xff] %v76_v11 }
   0x9   :  { %82 = vst [vmem:[%s145_s3] sm:$0xff] %v80_v13 }

</bundles_post_ra>
